<compile_context>
chip_gen: v5e
topology: v5e:2x2
jax: 0.10.0
libtpu: 0.0.40
codegen_flags: <defaults>
</compile_context>

<pallas_src>
import jax
import jax.numpy as jnp
from jax.experimental import pallas as pl
from jax.experimental.pallas import tpu as pltpu


def _mish_kernel(x_ref, o_ref):
    x = x_ref[...].astype(jnp.float32)
    e = jnp.exp(x)
    w = 1.0 + e
    # tanh(softplus(x)) == ((1+e^x)^2 - 1) / ((1+e^x)^2 + 1) == 1 - 2/(w^2+1)
    t = 1.0 - 2.0 / (w * w + 1.0)
    o_ref[...] = (x * t).astype(o_ref.dtype)


def mish(x: jax.Array, *, target_block_bytes: int = 2 * 1024 * 1024) -> jax.Array:
    """Elementwise Mish. Accepts any shape; returns same shape/dtype."""
    orig_shape = x.shape
    orig_dtype = x.dtype
    n = x.size
    itemsize = jnp.dtype(orig_dtype).itemsize

    # Widest lane dim (multiple of 128) dividing n -> no padding copy needed.
    lane = None
    for cand in (1024, 512, 256, 128):
        if n % cand == 0:
            lane = cand
            break
    x_flat = jnp.ravel(x)
    if lane is None:
        lane = 128
        pad = (-n) % lane
        x_flat = jnp.pad(x_flat, (0, pad))
    rows = x_flat.size // lane
    x2d = x_flat.reshape(rows, lane)

    # Row tile targeting ~2 MiB per buffer: amortizes the ~0.35us/grid-step
    # overhead, and with double-buffered in+out (~8 MiB total) stays well
    # inside the scoped-VMEM limit even on v7x (64 MiB physical).
    # Multiple of 32 so bf16/int8 packed-sublane tiles (16,128)/(32,128) hold.
    tr = (target_block_bytes // (lane * itemsize)) // 32 * 32
    tr = max(32, tr)
    if rows <= tr:
        tr = rows  # single block; block dims equal full array dims (valid)
    grid = (pl.cdiv(rows, tr),)  # ragged last block is masked by Pallas

    out2d = pl.pallas_call(
        _mish_kernel,
        out_shape=jax.ShapeDtypeStruct((rows, lane), orig_dtype),
        grid_spec=pltpu.PrefetchScalarGridSpec(
            num_scalar_prefetch=0,
            grid=grid,
            in_specs=[pl.BlockSpec((tr, lane), lambda i: (i, 0))],
            out_specs=pl.BlockSpec((tr, lane), lambda i: (i, 0)),
        ),
        compiler_params=pltpu.CompilerParams(
            dimension_semantics=("parallel",),
            vmem_limit_bytes=32 * 1024 * 1024,
        ),
        cost_estimate=pl.CostEstimate(
            flops=6 * n,
            transcendentals=2 * n,
            bytes_accessed=2 * n * itemsize,
        ),
    )(x2d)

    out_flat = out2d.reshape(-1)
    if out_flat.size != n:
        out_flat = out_flat[:n]
    return out_flat.reshape(orig_shape)


def _mish_ref(x):
    xf = x.astype(jnp.float32)
    sp = jnp.maximum(xf, 0.0) + jnp.log1p(jnp.exp(-jnp.abs(xf)))
    return (xf * jnp.tanh(sp)).astype(x.dtype)


if __name__ == "__main__":
    key = jax.random.PRNGKey(0)

    # Primary test: small NCHW feature map (as in the PyTorch module's head input path).
    x = jax.random.normal(key, (2, 4, 16, 16), dtype=jnp.float32)
    y = jax.block_until_ready(mish(x))
    y_ref = _mish_ref(x)
    assert y.shape == x.shape and y.dtype == x.dtype
    assert jnp.allclose(y, y_ref, atol=1e-5, rtol=1e-5)

    # Extra: shape not divisible by 128 (exercises the pad path).
    k1, k2 = jax.random.split(key)
    x2 = jax.random.normal(k1, (2, 3, 33, 29), dtype=jnp.float32)
    y2 = jax.block_until_ready(mish(x2))
    assert jnp.allclose(y2, _mish_ref(x2), atol=1e-5, rtol=1e-5)

    # Extra: multi-block grid with a ragged last block (cdiv path).
    x3 = jax.random.normal(k2, (1, 512, 40, 40), dtype=jnp.float32)
    y3 = jax.block_until_ready(mish(x3))
    assert jnp.allclose(y3, _mish_ref(x3), atol=1e-5, rtol=1e-5)

    print("KERNEL_OK")
</pallas_src>

<mosaic_0001>
module attributes {stable_mosaic.version = 11 : i64} {
  func.func @_mish_kernel(%arg0: i32, %arg1: memref<2x1024xf32, #tpu.memory_space<vmem>>, %arg2: memref<2x1024xf32, #tpu.memory_space<vmem>>) attributes {dimension_semantics = [#tpu.dimension_semantics<parallel>], iteration_bounds = array<i64: 1>, scalar_prefetch = 0 : i64, scratch_operands = 0 : i64, tpu.core_type = #tpu.core_type<tc>, window_params = [{transform_indices = @transform_0, window_bounds = array<i64: 2, 1024>}, {transform_indices = @transform_1, window_bounds = array<i64: 2, 1024>}]} {
    %c0 = arith.constant 0 : index
    %c0_0 = arith.constant 0 : index
    %0 = vector.load %arg1[%c0, %c0_0] : memref<2x1024xf32, #tpu.memory_space<vmem>>, vector<2x1024xf32>
    %1 = math.exp %0 : vector<2x1024xf32>
    %cst = arith.constant 1.000000e+00 : f32
    %2 = vector.broadcast %cst : f32 to vector<2x1024xf32>
    %3 = arith.addf %2, %1 : vector<2x1024xf32>
    %4 = arith.mulf %3, %3 : vector<2x1024xf32>
    %cst_1 = arith.constant 1.000000e+00 : f32
    %5 = vector.broadcast %cst_1 : f32 to vector<2x1024xf32>
    %6 = arith.addf %4, %5 : vector<2x1024xf32>
    %cst_2 = arith.constant 2.000000e+00 : f32
    %7 = vector.broadcast %cst_2 : f32 to vector<2x1024xf32>
    %8 = arith.divf %7, %6 : vector<2x1024xf32>
    %cst_3 = arith.constant 1.000000e+00 : f32
    %9 = vector.broadcast %cst_3 : f32 to vector<2x1024xf32>
    %10 = arith.subf %9, %8 : vector<2x1024xf32>
    %11 = arith.mulf %0, %10 : vector<2x1024xf32>
    %c0_4 = arith.constant 0 : index
    %c0_5 = arith.constant 0 : index
    %12 = vector.load %arg2[%c0_4, %c0_5] : memref<2x1024xf32, #tpu.memory_space<vmem>>, vector<2x1024xf32>
    tpu.vector_store %arg2[%c0_4, %c0_5], %11 {strides = array<i32>} : memref<2x1024xf32, #tpu.memory_space<vmem>>, vector<2x1024xf32>,
    return
  }
  func.func @transform_0(%arg0: i32) -> (i32, i32) {
    %c0_i32 = arith.constant 0 : i32
    %c0_i32_0 = arith.constant 0 : i32
    return %arg0, %c0_i32 : i32, i32
  }
  func.func @transform_1(%arg0: i32) -> (i32, i32) {
    %c0_i32 = arith.constant 0 : i32
    %c0_i32_0 = arith.constant 0 : i32
    return %arg0, %c0_i32 : i32, i32
  }
}

</mosaic_0001>

<bundles_post_ra>
// kernel: tpu_custom_call.1
= control target key start
LH: loop header
LB: loop body
LE: loop exit
PB: predicated region body
PF: predicated region fallthrough
CT: control target
= control target key end

     0   :  { %6 = vsyncpa [#allocation3], 0  ;;  %s168_s0 = inlined_call_operand.hbm [shape: f32[2,1024], index: 0, kind: input, shape index: {}]   ;;  %s169_s1 = inlined_call_operand.hbm [shape: f32[2,1024], index: 1, kind: output, shape index: {}]  }
   0x1   :  { %7 = vsyncpa [#allocation4], 0  ;;  %s13_s8 = sshll.u32 %s168_s0, 4  ;;  %s150_s9 = smov [#allocation2]   ;;  %s14_s8 = int_to_ptr.hbm [resolvable:$true] %s13_s8 }
   0x2   :  { %s15_s10 = sshll.u32 %s150_s9, 4  ;;  %s16_s10 = int_to_ptr.vmem [resolvable:$true] %s15_s10 }
   0x3   :  { %18 = dma.hbm_to_vmem [thread:$0]  %s14_s8, 256, %s16_s10, [#allocation3]  }
   0x4   :  { %146 = dma.done.wait [#allocation3], 256  }
   0x5   :  { %147 = vsyncadd [#allocation3], 4294967040  ;;  %v23_v0 = vld [vmem:[#allocation2] sm:$0xff]  ;;  %v24_v1 = vld [vmem:[#allocation2 + $0x8] sm:$0xff]  ;;  %s151_s0 = smov [#allocation5]   ;;  %s78_s14 = sshll.u32 %s169_s1, 4  ;;  %s79_s14 = int_to_ptr.hbm [resolvable:$true] %s78_s14 }
   0x6   :  { %v25_v2 = vmul.f32 1.442695, %v23_v0  ;;  %v27_v3 = vmul.f32 1.442695, %v24_v1  ;;  %s76_s11 = sshll.u32 %s151_s0, 4  ;;  %s77_s11 = int_to_ptr.vmem [resolvable:$true] %s76_s11 }
   0x8   :  { %90 = vpow2.f32 %v25_v2 }
   0x9   :  { %92 = vpow2.f32 %v27_v3 }
   0xe   :  { %v91_v4 = vpop.eup %90 }
   0xf   :  { %v93_v5 = vpop.eup %92  ;;  %v29_v6 = vadd.f32 1.0, %v91_v4 }
  0x10   :  { %v30_v7 = vadd.f32 1.0, %v93_v5 }
  0x11   :  { %v31_v8 = vmul.f32 %v29_v6, %v29_v6 }
  0x12   :  { %v32_v9 = vmul.f32 %v30_v7, %v30_v7 }
  0x13   :  { %v33_v10 = vadd.f32 1.0, %v31_v8 }
  0x14   :  { %v34_v11 = vadd.f32 1.0, %v32_v9 }
  0x15   :  { %94 = vrcp.f32 %v33_v10  ;;  %vm40_vm0 = vweird.f32 %v33_v10  ;;  %v46_v15 = vand.u32 2147483648, %v33_v10  ;;  %v44_v18 = vand.u32 2147483647, %v33_v10 }
  0x16   :  { %96 = vrcp.f32 %v34_v11  ;;  %v61_v19 = vand.u32 2147483648, %v34_v11  ;;  %vm55_vm2 = vweird.f32 %v34_v11  ;;  %v59_v21 = vand.u32 2147483647, %v34_v11 }
  0x17   :  { %v47_v23 = vor.u32 1.1754944e-38, %v46_v15  ;;  %vm45_vm5 = vcmp.eq.f32.partialorder %v44_v18, 8.507059e+37 }
  0x18   :  { %v62_v26 = vor.u32 1.1754944e-38, %v61_v19  ;;  %vm60_vm7 = vcmp.eq.f32.partialorder %v59_v21, 8.507059e+37 }
  0x1b   :  { %v95_v12 = vpop.eup %94 }
  0x1c   :  { %v97_v13 = vpop.eup %96  ;;  %v36_v14 = vmul.f32 %v95_v12, %v33_v10  ;;  %vm41_vm1 = vweird.f32 %v95_v12 }
  0x1d   :  { %v51_v16 = vmul.f32 %v97_v13, %v34_v11  ;;  %vm56_vm3 = vweird.f32 %v97_v13  ;;  %vm42_vm4 = vmor %vm40_vm0, %vm41_vm1 }
  0x1e   :  { %v37_v17 = vsub.f32 1.0, %v36_v14  ;;  %vm57_vm6 = vmor %vm55_vm2, %vm56_vm3 }
  0x1f   :  { %v52_v20 = vsub.f32 1.0, %v51_v16 }
  0x20   :  { %v38_v22 = vmul.f32 %v95_v12, %v37_v17 }
  0x21   :  { %v53_v24 = vmul.f32 %v97_v13, %v52_v20 }
  0x22   :  { %v39_v25 = vadd.f32 %v95_v12, %v38_v22 }
  0x23   :  { %v54_v27 = vadd.f32 %v97_v13, %v53_v24 }
  0x24   :  { %v43_v28 = vsel %vm42_vm4, %v95_v12, %v39_v25 }
  0x25   :  { %v48_v29 = vsel %vm45_vm5, %v47_v23, %v43_v28  ;;  %v58_v30 = vsel %vm57_vm6, %v97_v13, %v54_v27 }
  0x26   :  { %v49_v31 = vmul.f32 2.0, %v48_v29  ;;  %v63_v32 = vsel %vm60_vm7, %v62_v26, %v58_v30 }
  0x27   :  { %v64_v33 = vmul.f32 2.0, %v63_v32 }
  0x28   :  { %v65_v34 = vsub.f32 1.0, %v49_v31 }
  0x29   :  { %v66_v35 = vsub.f32 1.0, %v64_v33 }
  0x2a   :  { %v67_v36 = vmul.f32 %v65_v34, %v23_v0 }
  0x2b   :  { %v68_v37 = vmul.f32 %v66_v35, %v24_v1 }
  0x2c   :  { %69 = vst [vmem:[#allocation5] sm:$0xff] %v67_v36 }
  0x2d   :  { %70 = vst [vmem:[#allocation5 + $0x8] sm:$0xff] %v68_v37 }
  0x2e   :  { %81 = dma.vmem_to_hbm [thread:$0]  %s77_s11, 256, %s79_s14, [#allocation4]  }
  0x2f   :  { %148 = dma.done.wait [#allocation4], 256  }
  0x30   :  { %149 = vsyncadd [#allocation4], 4294967040 }
  0x31   :  { %86 = vsyncpa [#allocation3], 1 }
  0x32   :  { %87 = vsyncpa [#allocation4], 1 }

</bundles_post_ra>
